<compile_context>
chip_gen: v7x
topology: tpu7x:2x2x1
jax: 0.10.0
libtpu: 0.0.40
codegen_flags: <defaults>
</compile_context>

<pallas_src>
import functools

import jax
import jax.numpy as jnp
import numpy as np
from jax import lax
from jax.experimental import pallas as pl
from jax.experimental.pallas import tpu as pltpu

NEG = -1e30  # finite stand-in for -inf (avoids NaN from -inf - -inf)
BB = 8       # batch rows processed per grid step (fills vreg sublanes)


@functools.lru_cache(maxsize=None)
def _roll_moves_up():
    """True if pltpu.roll(x, +1, axis=-1)[j] == x[j-1] (np.roll semantics)."""
    def probe(x_ref, o_ref):
        o_ref[...] = pltpu.roll(x_ref[...], shift=1, axis=1)

    x = jnp.broadcast_to(jnp.arange(128, dtype=jnp.float32), (8, 128))
    y = pl.pallas_call(
        probe, out_shape=jax.ShapeDtypeStruct((8, 128), jnp.float32))(x)
    return bool(jax.device_get(y)[0, 1] == 0.0)


def _shift_right(x, k, fill, *, roll_up, lane_iota):
    """result[..., j] = x[..., j-k] for j >= k else `fill` (last axis)."""
    n = x.shape[-1]
    amount = k if roll_up else (n - k) % n
    rolled = pltpu.roll(x, shift=amount, axis=x.ndim - 1)
    return jnp.where(lane_iota >= k, rolled, fill)


def _ctc_kernel(tgt_ref, len_ref, pred_ref, loss_ref, alpha_ref, lp_ref, *,
                blank_idx, tT, C, S_pad, L_pad, roll_up, unroll):
    """One (8-sample batch block, time chunk) per grid step.

    tgt_ref : VMEM int32 (BB, S_pad)   padded targets
    len_ref : VMEM int32 (BB, 128)     target length broadcast along lanes
    pred_ref: VMEM      (BB, tT, C)    logits chunk (native dtype)
    loss_ref: VMEM f32  (BB, 128)      per-sample normalized loss (lane 0)
    alpha_ref: VMEM f32 (BB, L_pad)    alpha carry across time chunks
    lp_ref  : VMEM f32  (BB*tT, L_pad) gathered extended-label log-probs
    """
    t_chunk = pl.program_id(1)
    nt = pl.num_programs(1)

    s_iota = lax.broadcasted_iota(jnp.int32, (BB, L_pad), 1)

    # ---- init alpha carry at the first time chunk -----------------------
    # virtual alpha_{-1}: 0 at s==0, NEG elsewhere; applying the recursion at
    # global t==0 reproduces the standard CTC initialization.
    @pl.when(t_chunk == 0)
    def _():
        alpha_ref[...] = jnp.where(s_iota == 0, 0.0, NEG).astype(jnp.float32)

    # ---- log_softmax over classes (f32) ----------------------------------
    x = pred_ref[...].astype(jnp.float32)                     # (BB, tT, C)
    m = jnp.max(x, axis=2, keepdims=True)
    lse = m + jnp.log(jnp.sum(jnp.exp(x - m), axis=2, keepdims=True))
    logp = x - lse                                            # (BB, tT, C)

    # ---- MXU one-hot gather of extended-label log-probs ------------------
    # extended label: [blank, l0, blank, l1, ..., blank], lane-padded.
    # P[j, s] = 1 iff s == 2j + 1  (places label j at odd position s)
    j_iota = lax.broadcasted_iota(jnp.int32, (S_pad, L_pad), 0)
    sP_iota = lax.broadcasted_iota(jnp.int32, (S_pad, L_pad), 1)
    P = (sP_iota == 2 * j_iota + 1).astype(jnp.float32)       # (S_pad, L_pad)
    c_iota = lax.broadcasted_iota(jnp.int32, (C, S_pad), 0)   # (C, S_pad)
    even_lane = (lax.broadcasted_iota(jnp.int32, (1, L_pad), 1) % 2) == 0

    tgt = tgt_ref[...]                                        # (BB, S_pad)
    for b in range(BB):                                       # static unroll
        logp_b = logp[b]                                      # (tT, C)
        tgt_b = tgt[b:b + 1, :]                               # (1, S_pad)
        onehot_b = (tgt_b == c_iota).astype(jnp.float32)      # (C, S_pad)
        lp_lab_b = jnp.dot(logp_b, onehot_b,
                           preferred_element_type=jnp.float32)   # (tT, S_pad)
        lp_ext_b = jnp.dot(lp_lab_b, P,
                           preferred_element_type=jnp.float32)   # (tT, L_pad)
        lp_blank_b = logp_b[:, blank_idx:blank_idx + 1]           # (tT, 1)
        lp_ext_b = jnp.where(even_lane, lp_blank_b, lp_ext_b)     # (tT, L_pad)
        lp_ref[b * tT:(b + 1) * tT, :] = lp_ext_b

    # ---- skip mask: alpha[s-2] allowed iff s odd, label != prev, != blank -
    tgt_prev = jnp.concatenate(
        [jnp.full((BB, 1), -1, jnp.int32), tgt[:, :S_pad - 1]], axis=1)
    diff = jnp.logical_and(tgt != tgt_prev, tgt != blank_idx)
    skip = jnp.dot(diff.astype(jnp.float32), P,
                   preferred_element_type=jnp.float32) > 0.5      # (BB, L_pad)

    # ---- alpha recursion (log space) over this chunk's timesteps ----------
    def body(t, alpha):
        a1 = _shift_right(alpha, 1, NEG, roll_up=roll_up, lane_iota=s_iota)
        a2 = jnp.where(
            skip, _shift_right(alpha, 2, NEG, roll_up=roll_up,
                               lane_iota=s_iota), NEG)
        mm = jnp.maximum(alpha, jnp.maximum(a1, a2))
        lse3 = mm + jnp.log(jnp.exp(alpha - mm) + jnp.exp(a1 - mm)
                            + jnp.exp(a2 - mm))
        # assemble this timestep's (BB, L_pad) log-prob rows (row b*tT + t)
        rows = [lp_ref[pl.ds(b * tT + t, 1), :] for b in range(BB)]
        lp_t = jnp.concatenate(rows, axis=0)                  # (BB, L_pad)
        return lp_t + lse3

    alpha = lax.fori_loop(0, tT, body, alpha_ref[...], unroll=unroll)
    alpha_ref[...] = alpha

    # ---- finalize at the last time chunk ----------------------------------
    @pl.when(t_chunk == nt - 1)
    def _():
        S_b = len_ref[...][:, :1]                             # (BB, 1) int32
        end_mask = jnp.logical_or(
            s_iota == 2 * S_b,
            jnp.logical_and(s_iota == 2 * S_b - 1, S_b > 0))
        a_fin = jnp.where(end_mask, alpha, NEG)
        mf = jnp.max(a_fin, axis=1, keepdims=True)            # (BB, 1)
        ll = mf + jnp.log(jnp.sum(jnp.exp(a_fin - mf), axis=1, keepdims=True))
        loss = -ll
        loss = jnp.where(loss >= 1e20, 0.0, loss)             # zero_infinity
        denom = jnp.maximum(S_b, 1).astype(jnp.float32)
        loss = loss / denom                                   # 'mean': /target_len
        loss_ref[...] = jnp.broadcast_to(loss, (BB, 128))


def _pick_time_chunk(T, per_t_bytes, budget=8 * 1024 * 1024):
    """Largest multiple-of-8 divisor of T whose chunk fits the VMEM budget."""
    if T <= 8 or T * per_t_bytes <= budget:
        return T
    best = None
    for cand in range(8, T, 8):
        if T % cand == 0 and cand * per_t_bytes <= budget:
            best = cand
    return best if best is not None else T


def ctc_loss(pred, targets, target_lengths, *, blank_idx=0):
    """Equivalent of CTCLoss(params, reduction='mean').forward(pred, args)."""
    B, T, C = pred.shape
    S_max = targets.shape[1]
    L = 2 * S_max + 1

    B_pad = ((B + BB - 1) // BB) * BB
    S_pad = ((max(S_max, 1) + 127) // 128) * 128
    L_pad = ((L + 127) // 128) * 128

    per_t_bytes = BB * (2 * C * pred.dtype.itemsize + 4 * L_pad)
    tT = _pick_time_chunk(T, per_t_bytes)
    nt = T // tT
    nb = B_pad // BB

    # pad inputs (done once in HBM by XLA; pred stays in its native dtype)
    tgt = jnp.zeros((B_pad, S_pad), jnp.int32)
    tgt = tgt.at[:B, :S_max].set(targets.astype(jnp.int32))
    lens = jnp.zeros((B_pad,), jnp.int32).at[:B].set(
        target_lengths.astype(jnp.int32))
    lens2d = jnp.broadcast_to(lens[:, None], (B_pad, 128))
    if B_pad != B:
        pred_p = jnp.zeros((B_pad, T, C), pred.dtype).at[:B].set(pred)
    else:
        pred_p = pred

    kernel = functools.partial(
        _ctc_kernel, blank_idx=blank_idx, tT=tT, C=C, S_pad=S_pad,
        L_pad=L_pad, roll_up=_roll_moves_up(), unroll=min(4, tT))

    out = pl.pallas_call(
        kernel,
        out_shape=jax.ShapeDtypeStruct((B_pad, 128), jnp.float32),
        grid_spec=pltpu.PrefetchScalarGridSpec(
            num_scalar_prefetch=0,
            grid=(nb, nt),
            in_specs=[
                pl.BlockSpec((BB, S_pad), lambda i, t: (i, 0)),
                pl.BlockSpec((BB, 128), lambda i, t: (i, 0)),
                pl.BlockSpec((BB, tT, C), lambda i, t: (i, t, 0)),
            ],
            out_specs=pl.BlockSpec((BB, 128), lambda i, t: (i, 0)),
            scratch_shapes=[
                pltpu.VMEM((BB, L_pad), jnp.float32),       # alpha carry
                pltpu.VMEM((BB * tT, L_pad), jnp.float32),  # gathered log-probs
            ],
        ),
        compiler_params=pltpu.CompilerParams(
            dimension_semantics=("parallel", "arbitrary"),
            vmem_limit_bytes=32 * 1024 * 1024,
        ),
    )(tgt, lens2d, pred_p)

    per_sample = out[:B, 0]
    return jnp.mean(per_sample)  # reduction='mean' over batch


def _ctc_ref(pred, targets, target_lengths, blank_idx=0):
    """Pure numpy reference (torch.nn.CTCLoss 'mean', zero_infinity=True)."""
    logp = np.asarray(jax.nn.log_softmax(pred, axis=2))
    B, T, _ = logp.shape
    targets = np.asarray(targets)
    lens = np.asarray(target_lengths)

    def lse(vals):
        m = max(vals)
        if m == -np.inf:
            return -np.inf
        return m + np.log(sum(np.exp(v - m) for v in vals))

    losses = []
    for b in range(B):
        Sb = int(lens[b])
        ext = [blank_idx]
        for v in targets[b, :Sb]:
            ext += [int(v), blank_idx]
        L = 2 * Sb + 1
        alpha = np.full((L,), -np.inf)
        alpha[0] = logp[b, 0, ext[0]]
        if L > 1:
            alpha[1] = logp[b, 0, ext[1]]
        for t in range(1, T):
            new = np.full((L,), -np.inf)
            for s in range(L):
                cand = [alpha[s]]
                if s >= 1:
                    cand.append(alpha[s - 1])
                if s >= 2 and ext[s] != blank_idx and ext[s] != ext[s - 2]:
                    cand.append(alpha[s - 2])
                new[s] = logp[b, t, ext[s]] + lse(cand)
            alpha = new
        tail = [alpha[L - 1]] + ([alpha[L - 2]] if L >= 2 else [])
        loss = -lse(tail)
        if np.isinf(loss):
            loss = 0.0
        losses.append(loss / max(Sb, 1))
    return float(np.mean(losses))


if __name__ == "__main__":
    # deterministic "params": blank_idx = 0
    blank_idx = 0
    B, T, C, S = 2, 8, 16, 4

    key = jax.random.PRNGKey(0)
    k1, k2 = jax.random.split(key)
    pred = jax.random.normal(k1, (B, T, C), dtype=jnp.float32)        # logits
    targets = jax.random.randint(k2, (B, S), 1, C, dtype=jnp.int32)   # no blanks
    target_lengths = jnp.array([4, 3], dtype=jnp.int32)               # padded

    loss = ctc_loss(pred, targets, target_lengths, blank_idx=blank_idx)
    loss = jax.block_until_ready(loss)

    ref = _ctc_ref(pred, targets, target_lengths, blank_idx=blank_idx)
    assert np.isfinite(float(loss)), "kernel produced non-finite loss"
    assert abs(float(loss) - ref) < 1e-3, (float(loss), ref)

    print("KERNEL_OK")
</pallas_src>

<mosaic_0001>
module attributes {stable_mosaic.version = 11 : i64} {
  func.func @probe(%arg0: memref<8x128xf32, #tpu.memory_space<vmem>>, %arg1: memref<8x128xf32, #tpu.memory_space<vmem>>) attributes {dimension_semantics = [], scalar_prefetch = 0 : i64, scratch_operands = 0 : i64, tpu.core_type = #tpu.core_type<tc>} {
    %c0 = arith.constant 0 : index
    %c0_0 = arith.constant 0 : index
    %0 = vector.load %arg0[%c0, %c0_0] : memref<8x128xf32, #tpu.memory_space<vmem>>, vector<8x128xf32>
    %c1_i32 = arith.constant 1 : i32
    %1 = tpu.dynamic_rotate %0 by %c1_i32 dim 1 : vector<8x128xf32>, i32 -> vector<8x128xf32>
    %c0_1 = arith.constant 0 : index
    %c0_2 = arith.constant 0 : index
    %2 = vector.load %arg1[%c0_1, %c0_2] : memref<8x128xf32, #tpu.memory_space<vmem>>, vector<8x128xf32>
    tpu.vector_store %arg1[%c0_1, %c0_2], %1 {strides = array<i32>} : memref<8x128xf32, #tpu.memory_space<vmem>>, vector<8x128xf32>,
    return
  }
}

</mosaic_0001>

<bundles_post_ra>
// kernel: tpu_custom_call.1
= control target key start
LH: loop header
LB: loop body
LE: loop exit
PB: predicated region body
PF: predicated region fallthrough
CT: control target
= control target key end

     0   :  { %6 = vsyncpa [#allocation3], 0  ;;  %s128_s0 = inlined_call_operand.hbm [shape: f32[8,128], index: 0, kind: input, shape index: {}]   ;;  %s129_s1 = inlined_call_operand.hbm [shape: f32[8,128], index: 1, kind: output, shape index: {}]  }
   0x1   :  { %7 = vsyncpa [#allocation4], 0  ;;  %s91_s6 = smov [#allocation2]   ;;  %s43_s10 = scalar_lea.hbm %s128_s0, 128 }
   0x2   :  { %s14_s7 = sshll.u32 %s91_s6, 4  ;;  %p44_p0 = scmp.ne.s32.totalorder %s128_s0, %s43_s10  ;;  %s15_s7 = int_to_ptr.vmem [resolvable:$true] %s14_s7 }
   0x3   :  { %p47_p1 = scmp.lt.u32.totalorder %s43_s10, %s128_s0 }
   0x5   :  { %p49_p2 = pnand %p47_p1, %p44_p0 }
   0x7   :  { %52 = shalt.err (!%p49_p2)
}
   0x8   :  { %s53_s15 = scalar_lea.vmem %s15_s7, 128  ;;  %p58_p4 = scmp.lt.s32.totalorder %s15_s7, %s15_s7 }
   0x9   :  { %p54_p3 = scmp.ne.s32.totalorder %s15_s7, %s53_s15  ;;  %p59_p5 = scmp.lt.s32.totalorder %s53_s15, %s53_s15 }
   0xb   :  { %p60_p6 = por %p59_p5, %p58_p4 }
   0xd   :  { %p61_p7 = pnand %p60_p6, %p54_p3 }
   0xf   :  { %64 = shalt.err (!%p61_p7)
}
  0x10   :  { %17 = dma.hbm_to_vmem [thread:$0]  %s128_s0, 128, %s15_s7, [#allocation3]  }
  0x11   :  { %87 = dma.done.wait [#allocation3], 128  }
  0x12   :  { %88 = vsyncadd [#allocation3], 4294967168  ;;  %v21_v0 = vld [vmem:[#allocation2] sm:$0xff]  ;;  %s92_s18 = smov 1   ;;  %s93_s19 = smov [#allocation5]  }
  0x13   :  { %22 = vrot.lane.b32.xlu0 %v21_v0, %s92_s18  ;;  %s31_s20 = sshll.u32 %s93_s19, 4  ;;  %s32_s20 = int_to_ptr.vmem [resolvable:$true] %s31_s20 }
  0x14   :  { %s65_s21 = scalar_lea.vmem %s32_s20, 128  ;;  %p70_p9 = scmp.lt.s32.totalorder %s32_s20, %s32_s20 }
  0x15   :  { %p66_p8 = scmp.ne.s32.totalorder %s32_s20, %s65_s21  ;;  %p71_p10 = scmp.lt.s32.totalorder %s65_s21, %s65_s21 }
  0x17   :  { %p72_p11 = por %p71_p10, %p70_p9 }
  0x19   :  { %p73_p12 = pnand %p72_p11, %p66_p8 }
  0x85   :  { %v23_v1 = vpop.permute.xlu0 %22 }
  0x86   :  { %24 = vst [vmem:[#allocation5] sm:$0xff] %v23_v1 }
  0x87   :  { %76 = shalt.err (!%p73_p12)
}
  0x88   :  { %s77_s0 = scalar_lea.hbm %s129_s1, 128 }
  0x89   :  { %p78_p13 = scmp.ne.s32.totalorder %s129_s1, %s77_s0  ;;  %p81_p0 = scmp.lt.u32.totalorder %s77_s0, %s129_s1 }
  0x8b   :  { %p83_p1 = pnand %p81_p0, %p78_p13 }
  0x8d   :  { %86 = shalt.err (!%p83_p1)
}
  0x8e   :  { %34 = dma.vmem_to_hbm [thread:$0]  %s32_s20, 128, %s129_s1, [#allocation4]  }
  0x8f   :  { %89 = dma.done.wait [#allocation4], 128  }
  0x90   :  { %90 = vsyncadd [#allocation4], 4294967168 }
  0x91   :  { %38 = vsyncpa [#allocation3], 1 }
  0x92   :  { %39 = vsyncpa [#allocation4], 1 }

</bundles_post_ra>
